<compile_context>
chip_gen: v7x
topology: tpu7x:2x2x1
jax: 0.10.0
libtpu: 0.0.40
codegen_flags: <defaults>
</compile_context>

<pallas_src>
import jax
import jax.numpy as jnp
from jax.experimental import pallas as pl
from jax.experimental.pallas import tpu as pltpu


def _round_up(n, m):
    return ((n + m - 1) // m) * m


def autoencoder_kernel(
    x_ref,
    w1_ref, b1_ref,     # feat_pad -> 128
    w2_ref, b2_ref,     # 128 -> 64
    w34_ref, b34_ref,   # fused 64 -> latent -> 64   (no activation in between)
    w5_ref, b5_ref,     # 64 -> 128
    w6_ref, b6_ref,     # 128 -> feat_pad
    out_ref,
):
    x = x_ref[...]

    h = jnp.dot(x, w1_ref[...], preferred_element_type=jnp.float32) + b1_ref[...]
    h = jnp.maximum(h, 0.0)
    h = jnp.dot(h, w2_ref[...], preferred_element_type=jnp.float32) + b2_ref[...]
    h = jnp.maximum(h, 0.0)
    # fused encoder-tail + decoder-head (Linear(64,latent) o Linear(latent,64)), then ReLU
    h = jnp.dot(h, w34_ref[...], preferred_element_type=jnp.float32) + b34_ref[...]
    h = jnp.maximum(h, 0.0)
    h = jnp.dot(h, w5_ref[...], preferred_element_type=jnp.float32) + b5_ref[...]
    h = jnp.maximum(h, 0.0)
    y = jnp.dot(h, w6_ref[...], preferred_element_type=jnp.float32) + b6_ref[...]

    out_ref[...] = jax.nn.sigmoid(y).astype(out_ref.dtype)


def autoencoder_forward(x, params, *, tile_b=512):
    """x: [B, feat_dim] float32; params: list of 6 (W[in,out], b[1,out]) pairs."""
    B, feat_dim = x.shape
    (w1, b1), (w2, b2), (w3, b3), (w4, b4), (w5, b5), (w6, b6) = params

    # --- algebraic fusion of the activation-free latent bottleneck ---
    w34 = (w3 @ w4).astype(jnp.float32)            # [64, 64]
    b34 = (b3 @ w4 + b4).astype(jnp.float32)       # [1, 64]

    # --- wrapper-side padding: lane-dense feature axis, tile-aligned batch ---
    f_pad = _round_up(feat_dim, 128)
    tile_b = max(8, min(_round_up(tile_b, 8), _round_up(B, 8)))
    b_pad = _round_up(B, tile_b)

    xp = jnp.zeros((b_pad, f_pad), jnp.float32).at[:B, :feat_dim].set(x)
    w1p = jnp.zeros((f_pad, 128), jnp.float32).at[:feat_dim, :].set(w1)
    w6p = jnp.zeros((128, f_pad), jnp.float32).at[:, :feat_dim].set(w6)
    b6p = jnp.zeros((1, f_pad), jnp.float32).at[:, :feat_dim].set(b6)

    weights = [w1p, b1, w2, b2, w34, b34, w5, b5, w6p, b6p]

    grid = (b_pad // tile_b,)

    def resident_spec(a):
        # full-array block, constant block index -> DMA'd once, stays in VMEM
        return pl.BlockSpec(a.shape, lambda i: (0, 0))

    flops = 2 * b_pad * (f_pad * 128 + 128 * 64 + 64 * 64 + 64 * 128 + 128 * f_pad)
    bytes_accessed = 4 * (2 * b_pad * f_pad + sum(int(a.size) for a in weights))
    cost = pl.CostEstimate(
        flops=flops,
        transcendentals=b_pad * f_pad,       # sigmoid
        bytes_accessed=bytes_accessed,
    )

    out_pad = pl.pallas_call(
        autoencoder_kernel,
        out_shape=jax.ShapeDtypeStruct((b_pad, f_pad), jnp.float32),
        grid_spec=pltpu.PrefetchScalarGridSpec(
            num_scalar_prefetch=0,
            grid=grid,
            in_specs=[pl.BlockSpec((tile_b, f_pad), lambda i: (i, 0))]
            + [resident_spec(a) for a in weights],
            out_specs=pl.BlockSpec((tile_b, f_pad), lambda i: (i, 0)),
        ),
        compiler_params=pltpu.CompilerParams(
            dimension_semantics=("parallel",),
            vmem_limit_bytes=32 * 1024 * 1024,
        ),
        cost_estimate=cost,
    )(xp, *weights)

    return out_pad[:B, :feat_dim]


def init_params(key, feat_dim, latent_dim):
    """Deterministic init mimicking nn.Linear's U(-1/sqrt(fan_in), 1/sqrt(fan_in)).
    Weights stored pre-transposed as [in, out] so the kernel does y = x @ W + b."""
    dims = [
        (feat_dim, 128), (128, 64), (64, latent_dim),   # encoder
        (latent_dim, 64), (64, 128), (128, feat_dim),   # decoder
    ]
    params = []
    for (din, dout) in dims:
        key, kw, kb = jax.random.split(key, 3)
        bound = 1.0 / jnp.sqrt(jnp.float32(din))
        w = jax.random.uniform(kw, (din, dout), jnp.float32, -bound, bound)
        b = jax.random.uniform(kb, (1, dout), jnp.float32, -bound, bound)
        params.append((w, b))
    return params


def reference_forward(x, params):
    """Pure-JAX reference matching the PyTorch forward exactly (no fusion)."""
    h = jnp.maximum(x @ params[0][0] + params[0][1], 0.0)
    h = jnp.maximum(h @ params[1][0] + params[1][1], 0.0)
    z = h @ params[2][0] + params[2][1]
    h = jnp.maximum(z @ params[3][0] + params[3][1], 0.0)
    h = jnp.maximum(h @ params[4][0] + params[4][1], 0.0)
    return jax.nn.sigmoid(h @ params[5][0] + params[5][1])


if __name__ == "__main__":
    feat_dim = 16
    latent_dim = 2
    batch = 8

    key = jax.random.PRNGKey(0)
    key, kx = jax.random.split(key)
    # inputs scaled to [-1, 1] like MinMaxScaler(feature_range=(-1, 1))
    x = jax.random.uniform(kx, (batch, feat_dim), jnp.float32, -1.0, 1.0)

    params = init_params(key, feat_dim, latent_dim)

    out = autoencoder_forward(x, params)
    out = jax.block_until_ready(out)

    ref = reference_forward(x, params)
    assert out.shape == (batch, feat_dim)
    assert jnp.allclose(out, ref, atol=1e-5, rtol=1e-5), "mismatch vs JAX reference"

    print("KERNEL_OK")
</pallas_src>

<mosaic_0001>
module attributes {stable_mosaic.version = 11 : i64} {
  func.func @autoencoder_kernel(%arg0: i32, %arg1: memref<8x128xf32, #tpu.memory_space<vmem>>, %arg2: memref<128x128xf32, #tpu.memory_space<vmem>>, %arg3: memref<1x128xf32, #tpu.memory_space<vmem>>, %arg4: memref<128x64xf32, #tpu.memory_space<vmem>>, %arg5: memref<1x64xf32, #tpu.memory_space<vmem>>, %arg6: memref<64x64xf32, #tpu.memory_space<vmem>>, %arg7: memref<1x64xf32, #tpu.memory_space<vmem>>, %arg8: memref<64x128xf32, #tpu.memory_space<vmem>>, %arg9: memref<1x128xf32, #tpu.memory_space<vmem>>, %arg10: memref<128x128xf32, #tpu.memory_space<vmem>>, %arg11: memref<1x128xf32, #tpu.memory_space<vmem>>, %arg12: memref<8x128xf32, #tpu.memory_space<vmem>>) attributes {dimension_semantics = [#tpu.dimension_semantics<parallel>], iteration_bounds = array<i64: 1>, scalar_prefetch = 0 : i64, scratch_operands = 0 : i64, tpu.core_type = #tpu.core_type<tc>, window_params = [{transform_indices = @transform_0, window_bounds = array<i64: 8, 128>}, {pipeline_mode = #tpu.pipeline_mode<synchronous>, transform_indices = @transform_1, window_bounds = array<i64: 128, 128>}, {pipeline_mode = #tpu.pipeline_mode<synchronous>, transform_indices = @transform_2, window_bounds = array<i64: 1, 128>}, {pipeline_mode = #tpu.pipeline_mode<synchronous>, transform_indices = @transform_3, window_bounds = array<i64: 128, 64>}, {pipeline_mode = #tpu.pipeline_mode<synchronous>, transform_indices = @transform_4, window_bounds = array<i64: 1, 64>}, {pipeline_mode = #tpu.pipeline_mode<synchronous>, transform_indices = @transform_5, window_bounds = array<i64: 64, 64>}, {pipeline_mode = #tpu.pipeline_mode<synchronous>, transform_indices = @transform_6, window_bounds = array<i64: 1, 64>}, {pipeline_mode = #tpu.pipeline_mode<synchronous>, transform_indices = @transform_7, window_bounds = array<i64: 64, 128>}, {pipeline_mode = #tpu.pipeline_mode<synchronous>, transform_indices = @transform_8, window_bounds = array<i64: 1, 128>}, {pipeline_mode = #tpu.pipeline_mode<synchronous>, transform_indices = @transform_9, window_bounds = array<i64: 128, 128>}, {pipeline_mode = #tpu.pipeline_mode<synchronous>, transform_indices = @transform_10, window_bounds = array<i64: 1, 128>}, {transform_indices = @transform_11, window_bounds = array<i64: 8, 128>}]} {
    %c0 = arith.constant 0 : index
    %c0_0 = arith.constant 0 : index
    %0 = vector.load %arg1[%c0, %c0_0] : memref<8x128xf32, #tpu.memory_space<vmem>>, vector<8x128xf32>
    %c0_1 = arith.constant 0 : index
    %c0_2 = arith.constant 0 : index
    %1 = vector.load %arg2[%c0_1, %c0_2] : memref<128x128xf32, #tpu.memory_space<vmem>>, vector<128x128xf32>
    %cst = arith.constant dense<0.000000e+00> : vector<8x128xf32>
    %2 = tpu.matmul %0, %1, %cst {dimension_numbers = #tpu.dot_dimension_numbers<[1], [0], [0], [1], [0, 0, 1, 1], [], []>} : vector<8x128xf32>, vector<128x128xf32>, vector<8x128xf32> -> vector<8x128xf32>
    %c0_3 = arith.constant 0 : index
    %c0_4 = arith.constant 0 : index
    %3 = vector.load %arg3[%c0_3, %c0_4] : memref<1x128xf32, #tpu.memory_space<vmem>>, vector<1x128xf32>
    %4 = vector.broadcast %3 : vector<1x128xf32> to vector<8x128xf32>
    %5 = arith.addf %2, %4 : vector<8x128xf32>
    %cst_5 = arith.constant 0.000000e+00 : f32
    %6 = vector.broadcast %cst_5 : f32 to vector<8x128xf32>
    %7 = arith.maximumf %5, %6 : vector<8x128xf32>
    %c0_6 = arith.constant 0 : index
    %c0_7 = arith.constant 0 : index
    %8 = vector.load %arg4[%c0_6, %c0_7] : memref<128x64xf32, #tpu.memory_space<vmem>>, vector<128x64xf32>
    %cst_8 = arith.constant dense<0.000000e+00> : vector<8x64xf32>
    %9 = tpu.matmul %7, %8, %cst_8 {dimension_numbers = #tpu.dot_dimension_numbers<[1], [0], [0], [1], [0, 0, 1, 1], [], []>} : vector<8x128xf32>, vector<128x64xf32>, vector<8x64xf32> -> vector<8x64xf32>
    %c0_9 = arith.constant 0 : index
    %c0_10 = arith.constant 0 : index
    %10 = vector.load %arg5[%c0_9, %c0_10] : memref<1x64xf32, #tpu.memory_space<vmem>>, vector<1x64xf32>
    %11 = vector.broadcast %10 : vector<1x64xf32> to vector<8x64xf32>
    %12 = arith.addf %9, %11 : vector<8x64xf32>
    %cst_11 = arith.constant 0.000000e+00 : f32
    %13 = vector.broadcast %cst_11 : f32 to vector<8x64xf32>
    %14 = arith.maximumf %12, %13 : vector<8x64xf32>
    %c0_12 = arith.constant 0 : index
    %c0_13 = arith.constant 0 : index
    %15 = vector.load %arg6[%c0_12, %c0_13] : memref<64x64xf32, #tpu.memory_space<vmem>>, vector<64x64xf32>
    %cst_14 = arith.constant dense<0.000000e+00> : vector<8x64xf32>
    %16 = tpu.matmul %14, %15, %cst_14 {dimension_numbers = #tpu.dot_dimension_numbers<[1], [0], [0], [1], [0, 0, 1, 1], [], []>} : vector<8x64xf32>, vector<64x64xf32>, vector<8x64xf32> -> vector<8x64xf32>
    %c0_15 = arith.constant 0 : index
    %c0_16 = arith.constant 0 : index
    %17 = vector.load %arg7[%c0_15, %c0_16] : memref<1x64xf32, #tpu.memory_space<vmem>>, vector<1x64xf32>
    %18 = vector.broadcast %17 : vector<1x64xf32> to vector<8x64xf32>
    %19 = arith.addf %16, %18 : vector<8x64xf32>
    %cst_17 = arith.constant 0.000000e+00 : f32
    %20 = vector.broadcast %cst_17 : f32 to vector<8x64xf32>
    %21 = arith.maximumf %19, %20 : vector<8x64xf32>
    %c0_18 = arith.constant 0 : index
    %c0_19 = arith.constant 0 : index
    %22 = vector.load %arg8[%c0_18, %c0_19] : memref<64x128xf32, #tpu.memory_space<vmem>>, vector<64x128xf32>
    %cst_20 = arith.constant dense<0.000000e+00> : vector<8x128xf32>
    %23 = tpu.matmul %21, %22, %cst_20 {dimension_numbers = #tpu.dot_dimension_numbers<[1], [0], [0], [1], [0, 0, 1, 1], [], []>} : vector<8x64xf32>, vector<64x128xf32>, vector<8x128xf32> -> vector<8x128xf32>
    %c0_21 = arith.constant 0 : index
    %c0_22 = arith.constant 0 : index
    %24 = vector.load %arg9[%c0_21, %c0_22] : memref<1x128xf32, #tpu.memory_space<vmem>>, vector<1x128xf32>
    %25 = vector.broadcast %24 : vector<1x128xf32> to vector<8x128xf32>
    %26 = arith.addf %23, %25 : vector<8x128xf32>
    %cst_23 = arith.constant 0.000000e+00 : f32
    %27 = vector.broadcast %cst_23 : f32 to vector<8x128xf32>
    %28 = arith.maximumf %26, %27 : vector<8x128xf32>
    %c0_24 = arith.constant 0 : index
    %c0_25 = arith.constant 0 : index
    %29 = vector.load %arg10[%c0_24, %c0_25] : memref<128x128xf32, #tpu.memory_space<vmem>>, vector<128x128xf32>
    %cst_26 = arith.constant dense<0.000000e+00> : vector<8x128xf32>
    %30 = tpu.matmul %28, %29, %cst_26 {dimension_numbers = #tpu.dot_dimension_numbers<[1], [0], [0], [1], [0, 0, 1, 1], [], []>} : vector<8x128xf32>, vector<128x128xf32>, vector<8x128xf32> -> vector<8x128xf32>
    %c0_27 = arith.constant 0 : index
    %c0_28 = arith.constant 0 : index
    %31 = vector.load %arg11[%c0_27, %c0_28] : memref<1x128xf32, #tpu.memory_space<vmem>>, vector<1x128xf32>
    %32 = vector.broadcast %31 : vector<1x128xf32> to vector<8x128xf32>
    %33 = arith.addf %30, %32 : vector<8x128xf32>
    %34 = arith.negf %33 : vector<8x128xf32>
    %35 = math.exp %34 : vector<8x128xf32>
    %cst_29 = arith.constant 1.000000e+00 : f32
    %36 = vector.broadcast %cst_29 : f32 to vector<8x128xf32>
    %37 = arith.addf %36, %35 : vector<8x128xf32>
    %38 = arith.divf %36, %37 : vector<8x128xf32>
    %c0_30 = arith.constant 0 : index
    %c0_31 = arith.constant 0 : index
    %39 = vector.load %arg12[%c0_30, %c0_31] : memref<8x128xf32, #tpu.memory_space<vmem>>, vector<8x128xf32>
    tpu.vector_store %arg12[%c0_30, %c0_31], %38 {strides = array<i32>} : memref<8x128xf32, #tpu.memory_space<vmem>>, vector<8x128xf32>,
    return
  }
  func.func @transform_0(%arg0: i32) -> (i32, i32) {
    %c0_i32 = arith.constant 0 : i32
    %c0_i32_0 = arith.constant 0 : i32
    return %arg0, %c0_i32 : i32, i32
  }
  func.func @transform_1(%arg0: i32) -> (i32, i32) {
    %c0_i32 = arith.constant 0 : i32
    %c0_i32_0 = arith.constant 0 : i32
    %c0_i32_1 = arith.constant 0 : i32
    return %c0_i32, %c0_i32_0 : i32, i32
  }
  func.func @transform_2(%arg0: i32) -> (i32, i32) {
    %c0_i32 = arith.constant 0 : i32
    %c0_i32_0 = arith.constant 0 : i32
    %c0_i32_1 = arith.constant 0 : i32
    return %c0_i32, %c0_i32_0 : i32, i32
  }
  func.func @transform_3(%arg0: i32) -> (i32, i32) {
    %c0_i32 = arith.constant 0 : i32
    %c0_i32_0 = arith.constant 0 : i32
    %c0_i32_1 = arith.constant 0 : i32
    return %c0_i32, %c0_i32_0 : i32, i32
  }
  func.func @transform_4(%arg0: i32) -> (i32, i32) {
    %c0_i32 = arith.constant 0 : i32
    %c0_i32_0 = arith.constant 0 : i32
    %c0_i32_1 = arith.constant 0 : i32
    return %c0_i32, %c0_i32_0 : i32, i32
  }
  func.func @transform_5(%arg0: i32) -> (i32, i32) {
    %c0_i32 = arith.constant 0 : i32
    %c0_i32_0 = arith.constant 0 : i32
    %c0_i32_1 = arith.constant 0 : i32
    return %c0_i32, %c0_i32_0 : i32, i32
  }
  func.func @transform_6(%arg0: i32) -> (i32, i32) {
    %c0_i32 = arith.constant 0 : i32
    %c0_i32_0 = arith.constant 0 : i32
    %c0_i32_1 = arith.constant 0 : i32
    return %c0_i32, %c0_i32_0 : i32, i32
  }
  func.func @transform_7(%arg0: i32) -> (i32, i32) {
    %c0_i32 = arith.constant 0 : i32
    %c0_i32_0 = arith.constant 0 : i32
    %c0_i32_1 = arith.constant 0 : i32
    return %c0_i32, %c0_i32_0 : i32, i32
  }
  func.func @transform_8(%arg0: i32) -> (i32, i32) {
    %c0_i32 = arith.constant 0 : i32
    %c0_i32_0 = arith.constant 0 : i32
    %c0_i32_1 = arith.constant 0 : i32
    return %c0_i32, %c0_i32_0 : i32, i32
  }
  func.func @transform_9(%arg0: i32) -> (i32, i32) {
    %c0_i32 = arith.constant 0 : i32
    %c0_i32_0 = arith.constant 0 : i32
    %c0_i32_1 = arith.constant 0 : i32
    return %c0_i32, %c0_i32_0 : i32, i32
  }
  func.func @transform_10(%arg0: i32) -> (i32, i32) {
    %c0_i32 = arith.constant 0 : i32
    %c0_i32_0 = arith.constant 0 : i32
    %c0_i32_1 = arith.constant 0 : i32
    return %c0_i32, %c0_i32_0 : i32, i32
  }
  func.func @transform_11(%arg0: i32) -> (i32, i32) {
    %c0_i32 = arith.constant 0 : i32
    %c0_i32_0 = arith.constant 0 : i32
    return %arg0, %c0_i32 : i32, i32
  }
}

</mosaic_0001>

<bundles_post_ra>
// kernel: tpu_custom_call.1
= control target key start
LH: loop header
LB: loop body
LE: loop exit
PB: predicated region body
PF: predicated region fallthrough
CT: control target
= control target key end

     0   :  { %16 = vsyncpa [#allocation3], 0  ;;  %s1287_s0 = inlined_call_operand.hbm [shape: f32[8,128], index: 0, kind: input, shape index: {}]   ;;  %s1288_s1 = inlined_call_operand.vmem [shape: f32[128,128], index: 1, kind: input, shape index: {}]   ;;  %s1289_s2 = inlined_call_operand.vmem [shape: f32[1,128], index: 2, kind: input, shape index: {}]   ;;  %s1290_s3 = inlined_call_operand.vmem [shape: f32[128,64], index: 3, kind: input, shape index: {}]   ;;  %s1291_s4 = inlined_call_operand.vmem [shape: f32[1,64], index: 4, kind: input, shape index: {}]   ;;  %s1292_s5 = inlined_call_operand.vmem [shape: f32[64,64], index: 5, kind: input, shape index: {}]   ;;  %s1293_s6 = inlined_call_operand.vmem [shape: f32[1,64], index: 6, kind: input, shape index: {}]   ;;  %s1294_s7 = inlined_call_operand.hbm [shape: f32[64,128], index: 7, kind: input, shape index: {}]   ;;  %s1295_s8 = inlined_call_operand.vmem [shape: f32[1,128], index: 8, kind: input, shape index: {}]   ;;  %s1296_s9 = inlined_call_operand.hbm [shape: f32[128,128], index: 9, kind: input, shape index: {}]   ;;  %s1297_s10 = inlined_call_operand.vmem [shape: f32[1,128], index: 10, kind: input, shape index: {}]   ;;  %s1298_s11 = inlined_call_operand.hbm [shape: f32[8,128], index: 11, kind: output, shape index: {}]  }
   0x1   :  { %17 = vsyncpa [#allocation6], 0 }
   0x2   :  { %18 = vsyncpa [#allocation4], 0  ;;  %s985_s17 = smov [#allocation5]   ;;  %s891_s21 = scalar_lea.hbm %s1294_s7, 1024 }
   0x3   :  { %s46_s18 = sshll.u32 %s985_s17, 4  ;;  %p892_p0 = scmp.ne.s32.totalorder %s1294_s7, %s891_s21  ;;  %s47_s18 = int_to_ptr.vmem [resolvable:$true] %s46_s18 }
   0x4   :  { %p895_p1 = scmp.lt.u32.totalorder %s891_s21, %s1294_s7 }
   0x6   :  { %p897_p2 = pnand %p895_p1, %p892_p0 }
   0x8   :  { %900 = shalt.err (!%p897_p2)
}
   0x9   :  { %s901_s26 = scalar_lea.vmem %s47_s18, 1024  ;;  %p906_p4 = scmp.lt.s32.totalorder %s47_s18, %s47_s18 }
   0xa   :  { %p902_p3 = scmp.ne.s32.totalorder %s47_s18, %s901_s26  ;;  %p907_p5 = scmp.lt.s32.totalorder %s901_s26, %s901_s26 }
   0xc   :  { %p908_p6 = por %p907_p5, %p906_p4 }
   0xe   :  { %p909_p7 = pnand %p908_p6, %p902_p3 }
  0x10   :  { %912 = shalt.err (!%p909_p7)
}
  0x11   :  { %s986_s27 = smov 128   ;;  %s987_s28 = smov 8  }
  0x12   :  { %52 = dma.hbm_to_vmem [thread:$0]  %s1294_s7, 1024, %s47_s18, [#allocation6], %s986_s27, %s986_s27, %s987_s28  }
  0x13   :  { %s988_s12 = smov [#allocation2]   ;;  %s989_s14 = smov [#allocation7]  }
  0x14   :  { %s25_s13 = sshll.u32 %s988_s12, 4  ;;  %s60_s15 = sshll.u32 %s989_s14, 4  ;;  %s26_s13 = int_to_ptr.vmem [resolvable:$true] %s25_s13  ;;  %s61_s15 = int_to_ptr.vmem [resolvable:$true] %s60_s15 }
  0x15   :  { %s913_s19 = scalar_lea.hbm %s1287_s0, 128 }
  0x16   :  { %p914_p8 = scmp.ne.s32.totalorder %s1287_s0, %s913_s19  ;;  %p917_p9 = scmp.lt.u32.totalorder %s913_s19, %s1287_s0 }
  0x18   :  { %p919_p10 = pnand %p917_p9, %p914_p8 }
  0x1a   :  { %922 = shalt.err (!%p919_p10)
}
  0x1b   :  { %s923_s7 = scalar_lea.vmem %s26_s13, 128  ;;  %p928_p12 = scmp.lt.s32.totalorder %s26_s13, %s26_s13 }
  0x1c   :  { %p924_p11 = scmp.ne.s32.totalorder %s26_s13, %s923_s7  ;;  %p929_p13 = scmp.lt.s32.totalorder %s923_s7, %s923_s7 }
  0x1e   :  { %p930_p0 = por %p929_p13, %p928_p12 }
  0x20   :  { %p931_p1 = pnand %p930_p0, %p924_p11 }
  0x22   :  { %934 = shalt.err (!%p931_p1)
}
  0x23   :  { %28 = dma.hbm_to_vmem [thread:$0]  %s1287_s0, 128, %s26_s13, [#allocation3]  }
  0x24   :  { %s935_s29 = scalar_lea.hbm %s1296_s9, 2048 }
  0x25   :  { %p936_p2 = scmp.ne.s32.totalorder %s1296_s9, %s935_s29  ;;  %p939_p3 = scmp.lt.u32.totalorder %s935_s29, %s1296_s9 }
  0x27   :  { %p941_p4 = pnand %p939_p3, %p936_p2 }
  0x29   :  { %944 = shalt.err (!%p941_p4)
}
  0x2a   :  { %s945_s17 = scalar_lea.vmem %s61_s15, 2048  ;;  %p950_p6 = scmp.lt.s32.totalorder %s61_s15, %s61_s15 }
  0x2b   :  { %p946_p5 = scmp.ne.s32.totalorder %s61_s15, %s945_s17  ;;  %p951_p7 = scmp.lt.s32.totalorder %s945_s17, %s945_s17 }
  0x2d   :  { %p952_p8 = por %p951_p7, %p950_p6 }
  0x2f   :  { %p953_p9 = pnand %p952_p8, %p946_p5 }
  0x31   :  { %956 = shalt.err (!%p953_p9)
}
  0x32   :  { %66 = dma.hbm_to_vmem [thread:$0]  %s1296_s9, 2048, %s61_s15, [#allocation6], %s986_s27, %s986_s27, %s987_s28  }
  0x33   :  { %979 = dma.done.wait [#allocation3], 128  }
  0x34   :  { %980 = vsyncadd [#allocation3], 4294967168 }
  0x35   :  { %981 = dma.done.wait [#allocation6], 3072  }
  0x36   :  { %982 = vsyncadd [#allocation6], 4294964224  ;;  %v990_v0 = vmov 0.0|0.0   ;;  %vm991_vm0 = vmmov 0   ;;  %v992_v1 = vmov 0.0   ;;  %v79_v2 = vld [vmem:[%s1288_s1] sm:$0xff] }
  0x37   :  { %782 = vmatprep.subr.bf16.mxu0 %v990_v0  ;;  %671 = vmatprep.mubr.msk.f32.mxu0 %vm991_vm0, %v992_v1  ;;  %v80_v3 = vld [vmem:[%s1288_s1 + $0x8] sm:$0xff]  ;;  %v81_v4 = vld [vmem:[%s1288_s1 + $0x10] sm:$0xff]  ;;  %v82_v6 = vld [vmem:[%s1288_s1 + $0x18] sm:$0xff]  ;;  %vm282_vm1 = vcmask 523264   ;;  %s993_s14 = smov [#allocation8]  }
  0x38   :  { %806 = vmatprep.subr.bf16.mxu1 %v990_v0  ;;  %706 = vmatprep.mubr.msk.f32.mxu1 %vm991_vm0, %v992_v1  ;;  %v783_v5 = vpack.c.bf16 %v80_v3, %v79_v2  ;;  %v786_v7 = vpack.c.bf16 %v82_v6, %v81_v4  ;;  %v83_v8 = vld [vmem:[%s1288_s1 + $0x20] sm:$0xff]  ;;  %v84_v9 = vld [vmem:[%s1288_s1 + $0x28] sm:$0xff]  ;;  %v175_v12 = vld [vmem:[%s1290_s3 + $0x10] sm:$0xff]  ;;  %s552_s16 = sshll.u32 %s993_s14, 4  ;;  %s553_s16 = int_to_ptr.vmem [resolvable:$true] %s552_s16 }
  0x39   :  { %v173_v10 = vld [vmem:[%s1290_s3] sm:$0xff]  ;;  %v174_v11 = vld [vmem:[%s1290_s3 + $0x8] sm:$0xff]  ;;  %v176_v13 = vld [vmem:[%s1290_s3 + $0x18] sm:$0xff]  ;;  %v789_v14 = vpack.c.bf16 %v84_v9, %v83_v8  ;;  %p962_p11 = scmp.lt.s32.totalorder %s553_s16, %s553_s16 }
  0x3a   :  { %784 = vmatpush3.bf16.msra.mxu0 %v783_v5  ;;  %v807_v15 = vpack.c.bf16 %v174_v11, %v173_v10  ;;  %v85_v16 = vld [vmem:[%s1288_s1 + $0x30] sm:$0xff]  ;;  %v86_v17 = vld [vmem:[%s1288_s1 + $0x38] sm:$0xff]  ;;  %v810_v18 = vpack.c.bf16 %v176_v13, %v175_v12  ;;  %v177_v19 = vld [vmem:[%s1290_s3 + $0x20] sm:$0xff] }
  0x3b   :  { %785 = vmatprep.subr.bf16.mxu0 %v990_v0  ;;  %v178_v20 = vld [vmem:[%s1290_s3 + $0x28] sm:$0xff]  ;;  %v792_v21 = vpack.c.bf16 %v86_v17, %v85_v16  ;;  %v87_v22 = vld [vmem:[%s1288_s1 + $0x40] sm:$0xff]  ;;  %v179_v25 = vld [vmem:[%s1290_s3 + $0x30] sm:$0xff] }
  0x3c   :  { %808 = vmatpush3.bf16.msra.mxu1 %v807_v15  ;;  %v88_v23 = vld [vmem:[%s1288_s1 + $0x48] sm:$0xff]  ;;  %v813_v24 = vpack.c.bf16 %v178_v20, %v177_v19  ;;  %v180_v26 = vld [vmem:[%s1290_s3 + $0x38] sm:$0xff]  ;;  %v89_v28 = vld [vmem:[%s1288_s1 + $0x50] sm:$0xff] }
  0x3d   :  { %809 = vmatprep.subr.bf16.mxu1 %v990_v0  ;;  %v795_v27 = vpack.c.bf16 %v88_v23, %v87_v22  ;;  %v90_v29 = vld [vmem:[%s1288_s1 + $0x58] sm:$0xff]  ;;  %v816_v30 = vpack.c.bf16 %v180_v26, %v179_v25  ;;  %v181_v31 = vld [vmem:[%s1290_s3 + $0x40] sm:$0xff]  ;;  %v182_v32 = vld [vmem:[%s1290_s3 + $0x48] sm:$0xff] }
  0x3e   :  { %787 = vmatpush3.bf16.msra.mxu0 %v786_v7  ;;  %v798_v33 = vpack.c.bf16 %v90_v29, %v89_v28  ;;  %v91_v34 = vld [vmem:[%s1288_s1 + $0x60] sm:$0xff]  ;;  %v92_v35 = vld [vmem:[%s1288_s1 + $0x68] sm:$0xff]  ;;  %v819_v36 = vpack.c.bf16 %v182_v32, %v181_v31  ;;  %v183_v37 = vld [vmem:[%s1290_s3 + $0x50] sm:$0xff] }
  0x3f   :  { %788 = vmatprep.subr.bf16.mxu0 %v990_v0  ;;  %v184_v38 = vld [vmem:[%s1290_s3 + $0x58] sm:$0xff]  ;;  %v801_v39 = vpack.c.bf16 %v92_v35, %v91_v34  ;;  %v93_v40 = vld [vmem:[%s1288_s1 + $0x70] sm:$0xff]  ;;  %v185_v43 = vld [vmem:[%s1290_s3 + $0x60] sm:$0xff] }
  0x40   :  { %811 = vmatpush3.bf16.msra.mxu1 %v810_v18  ;;  %v94_v41 = vld [vmem:[%s1288_s1 + $0x78] sm:$0xff]  ;;  %v822_v42 = vpack.c.bf16 %v184_v38, %v183_v37  ;;  %v186_v44 = vld [vmem:[%s1290_s3 + $0x68] sm:$0xff]  ;;  %v78_v47 = vld [vmem:[#allocation2] sm:$0xff] }
  0x41   :  { %812 = vmatprep.subr.bf16.mxu1 %v990_v0  ;;  %v804_v45 = vpack.c.bf16 %v94_v41, %v93_v40  ;;  %v825_v46 = vpack.c.bf16 %v186_v44, %v185_v43  ;;  %v187_v48 = vld [vmem:[%s1290_s3 + $0x70] sm:$0xff]  ;;  %v188_v49 = vld [vmem:[%s1290_s3 + $0x78] sm:$0xff]  ;;  %v562_v51 = vld [vmem:[%s1289_s2] ss:$0 sm:$0xff] }
  0x42   :  { %790 = vmatpush3.bf16.msra.mxu0 %v789_v14  ;;  %v828_v50 = vpack.c.bf16 %v188_v49, %v187_v48  ;;  %v267_v52 = vld [vmem:[%s1292_s5] sm:$0xff]  ;;  %v268_v53 = vld [vmem:[%s1292_s5 + $0x8] sm:$0xff]  ;;  %v269_v59 = vld [vmem:[%s1292_s5 + $0x10] sm:$0xff] }
  0x43   :  { %791 = vmatprep.subr.bf16.mxu0 %v990_v0  ;;  %v831_v57 = vpack.c.bf16 %v268_v53, %v267_v52  ;;  %v270_v60 = vld [vmem:[%s1292_s5 + $0x18] sm:$0xff]  ;;  %v271_v62 = vld [vmem:[%s1292_s5 + $0x20] sm:$0xff]  ;;  %v272_v63 = vld [vmem:[%s1292_s5 + $0x28] sm:$0xff] }
  0x44   :  { %814 = vmatpush3.bf16.msra.mxu1 %v813_v24  ;;  %v834_v61 = vpack.c.bf16 %v270_v60, %v269_v59  ;;  %v837_v2 = vpack.c.bf16 %v272_v63, %v271_v62  ;;  %v273_v3 = vld [vmem:[%s1292_s5 + $0x30] sm:$0xff]  ;;  %v274_v4 = vld [vmem:[%s1292_s5 + $0x38] sm:$0xff]  ;;  %v563_v6 = vld [vmem:[%s1291_s4] ss:$0 sm:$0xff] }
  0x45   :  { %815 = vmatprep.subr.bf16.mxu1 %v990_v0  ;;  %v840_v5 = vpack.c.bf16 %v274_v4, %v273_v3  ;;  %v357_v7 = vld [vmem:[#allocation5] sm:$0xff]  ;;  %v358_v8 = vld [vmem:[#allocation5 + $0x8] sm:$0xff]  ;;  %v359_v14 = vld [vmem:[#allocation5 + $0x10] sm:$0xff] }
  0x46   :  { %793 = vmatpush3.bf16.msra.mxu0 %v792_v21  ;;  %v843_v12 = vpack.c.bf16 %v358_v8, %v357_v7  ;;  %v360_v15 = vld [vmem:[#allocation5 + $0x18] sm:$0xff]  ;;  %v361_v17 = vld [vmem:[#allocation5 + $0x20] sm:$0xff]  ;;  %v362_v18 = vld [vmem:[#allocation5 + $0x28] sm:$0xff] }
  0x47   :  { %794 = vmatprep.subr.bf16.mxu0 %v990_v0  ;;  %v846_v16 = vpack.c.bf16 %v360_v15, %v359_v14  ;;  %v849_v19 = vpack.c.bf16 %v362_v18, %v361_v17  ;;  %v363_v20 = vld [vmem:[#allocation5 + $0x30] sm:$0xff]  ;;  %v364_v21 = vld [vmem:[#allocation5 + $0x38] sm:$0xff]  ;;  %v446_v23 = vld [vmem:[#allocation7] sm:$0xff] }
  0x48   :  { %817 = vmatpush3.bf16.msra.mxu1 %v816_v30  ;;  %v852_v22 = vpack.c.bf16 %v364_v21, %v363_v20  ;;  %v447_v24 = vld [vmem:[#allocation7 + $0x8] sm:$0xff]  ;;  %v448_v25 = vld [vmem:[#allocation7 + $0x10] sm:$0xff]  ;;  %v450_v28 = vld [vmem:[#allocation7 + $0x20] sm:$0xff] }
  0x49   :  { %818 = vmatprep.subr.bf16.mxu1 %v990_v0  ;;  %v855_v26 = vpack.c.bf16 %v447_v24, %v446_v23  ;;  %v451_v29 = vld [vmem:[#allocation7 + $0x28] sm:$0xff]  ;;  %v452_v31 = vld [vmem:[#allocation7 + $0x30] sm:$0xff]  ;;  %v453_v32 = vld [vmem:[#allocation7 + $0x38] sm:$0xff] }
  0x4a   :  { %796 = vmatpush3.bf16.msra.mxu0 %v795_v27  ;;  %v861_v30 = vpack.c.bf16 %v451_v29, %v450_v28  ;;  %v454_v34 = vld [vmem:[#allocation7 + $0x40] sm:$0xff]  ;;  %v455_v35 = vld [vmem:[#allocation7 + $0x48] sm:$0xff]  ;;  %v456_v37 = vld [vmem:[#allocation7 + $0x50] sm:$0xff] }
  0x4b   :  { %797 = vmatprep.subr.bf16.mxu0 %v990_v0  ;;  %v457_v38 = vld [vmem:[#allocation7 + $0x58] sm:$0xff]  ;;  %v458_v40 = vld [vmem:[#allocation7 + $0x60] sm:$0xff]  ;;  %v459_v41 = vld [vmem:[#allocation7 + $0x68] sm:$0xff] }
  0x4c   :  { %820 = vmatpush3.bf16.msra.mxu1 %v819_v36  ;;  %v867_v36 = vpack.c.bf16 %v455_v35, %v454_v34  ;;  %v564_v43 = vld [vmem:[%s1293_s6] ss:$0 sm:$0xff]  ;;  %v460_v48 = vld [vmem:[#allocation7 + $0x70] sm:$0xff] }
  0x4d   :  { %821 = vmatprep.subr.bf16.mxu1 %v990_v0  ;;  %v461_v49 = vld [vmem:[#allocation7 + $0x78] sm:$0xff] }
  0x4e   :  { %799 = vmatpush3.bf16.msra.mxu0 %v798_v33  ;;  %v864_v33 = vpack.c.bf16 %v453_v32, %v452_v31 }
  0x4f   :  { %800 = vmatprep.subr.bf16.mxu0 %v990_v0 }
  0x50   :  { %823 = vmatpush3.bf16.msra.mxu1 %v822_v42  ;;  %v873_v42 = vpack.c.bf16 %v459_v41, %v458_v40 }
  0x51   :  { %824 = vmatprep.subr.bf16.mxu1 %v990_v0 }
  0x52   :  { %802 = vmatpush3.bf16.msra.mxu0 %v801_v39  ;;  %v870_v39 = vpack.c.bf16 %v457_v38, %v456_v37 }
  0x53   :  { %803 = vmatprep.subr.bf16.mxu0 %v990_v0 }
  0x54   :  { %826 = vmatpush3.bf16.msra.mxu1 %v825_v46 }
  0x55   :  { %827 = vmatprep.subr.bf16.mxu1 %v990_v0 }
  0x56   :  { %805 = vmatpush3.bf16.msra.mxu0 %v804_v45 }
  0x57   :  { %854 = vmatprep.subr.bf16.mxu0 %v990_v0 }
  0x58   :  { %829 = vmatpush3.bf16.msra.mxu1 %v828_v50  ;;  %v876_v50 = vpack.c.bf16 %v461_v49, %v460_v48 }
  0x59   :  { %672 = vmatmul.mubr.f32.vlgmr.msra.gmra.mrb[0].mxu0 %v78_v47  ;;  %830 = vmatprep.subr.bf16.mxu1 %v990_v0 }
  0x5a   :  { %779 = vmatprep.mubr.msk.f32.mxu0 %vm991_vm0, %v992_v1  ;;  %856 = vmatpush3.bf16.msra.mxu0 %v855_v26 }
  0x5b   :  { %857 = vmatprep.subr.bf16.mxu0 %v990_v0 }
 0x12c   :  { %v168_v54 = vpop.f32.mrb[0].mxu0 }
 0x12d   :  { %v169_v55 = vadd.f32 %v562_v51, %v168_v54  ;;  %v673_v56 = vpop.f32.mrb[1].mxu0  ;;  %v566_v51 = vld [vmem:[%s1295_s8] ss:$0 sm:$0xff]  ;;  %s957_s8 = scalar_lea.vmem %s553_s16, 128 }
 0x12e   :  { %p958_p10 = scmp.ne.s32.totalorder %s553_s16, %s957_s8  ;;  %p963_p12 = scmp.lt.s32.totalorder %s957_s8, %s957_s8 }
 0x12f   :  { %v172_v58 = vmax.f32 %v169_v55, 0.0  ;;  %v568_v55 = vld [vmem:[%s1297_s10] ss:$0 sm:$0xff] }
 0x130   :  { %p964_p13 = por %p963_p12, %p962_p11 }
 0x131   :  { %707 = vmatmul.mubr.f32.vlgmr.msra.gmra.mrb[0].mxu1 %v172_v58 }
 0x132   :  { %832 = vmatpush3.bf16.msra.mxu1 %v831_v57  ;;  %725 = vmatprep.mubr.msk.f32.mxu1 %vm991_vm0, %v992_v1  ;;  %p965_p0 = pnand %p964_p13, %p958_p10 }
 0x133   :  { %833 = vmatprep.subr.bf16.mxu1 %v990_v0 }
 0x136   :  { %835 = vmatpush3.bf16.msra.mxu1 %v834_v61 }
 0x137   :  { %836 = vmatprep.subr.bf16.mxu1 %v990_v0 }
 0x13a   :  { %838 = vmatpush3.bf16.msra.mxu1 %v837_v2 }
 0x13b   :  { %839 = vmatprep.subr.bf16.mxu1 %v990_v0 }
 0x13e   :  { %841 = vmatpush3.bf16.msra.mxu1 %v840_v5 }
 0x13f   :  { %842 = vmatprep.subr.bf16.mxu1 %v990_v0 }
 0x204   :  { %v262_v9 = vpop.f32.mrb[0].mxu1 }
 0x205   :  { %v263_v10 = vadd.f32 %v563_v6, %v262_v9  ;;  %v708_v11 = vpop.f32.mrb[1].mxu1 }
 0x207   :  { %v266_v13 = vmax.f32 %v263_v10, 0.0 }
 0x209   :  { %726 = vmatmul.mubr.msk.f32.vlgmr.msra.gmra.mrb[2].mxu1 %vm282_vm1, %v266_v13 }
 0x20a   :  { %844 = vmatpush3.bf16.msra.mxu1 %v843_v12  ;;  %744 = vmatprep.mubr.msk.f32.mxu1 %vm991_vm0, %v992_v1  ;;  %v449_v1 = vld [vmem:[#allocation7 + $0x18] sm:$0xff] }
 0x20b   :  { %845 = vmatprep.subr.bf16.mxu1 %v990_v0  ;;  %v858_v27 = vpack.c.bf16 %v449_v1, %v448_v25 }
 0x20d   :  { %859 = vmatpush3.bf16.msra.mxu0 %v858_v27 }
 0x20e   :  { %847 = vmatpush3.bf16.msra.mxu1 %v846_v16  ;;  %860 = vmatprep.subr.bf16.mxu0 %v990_v0 }
 0x20f   :  { %848 = vmatprep.subr.bf16.mxu1 %v990_v0 }
 0x211   :  { %862 = vmatpush3.bf16.msra.mxu0 %v861_v30 }
 0x212   :  { %850 = vmatpush3.bf16.msra.mxu1 %v849_v19  ;;  %863 = vmatprep.subr.bf16.mxu0 %v990_v0 }
 0x213   :  { %851 = vmatprep.subr.bf16.mxu1 %v990_v0 }
 0x215   :  { %865 = vmatpush3.bf16.msra.mxu0 %v864_v33 }
 0x216   :  { %853 = vmatpush3.bf16.msra.mxu1 %v852_v22  ;;  %866 = vmatprep.subr.bf16.mxu0 %v990_v0 }
 0x219   :  { %868 = vmatpush3.bf16.msra.mxu0 %v867_v36 }
 0x21a   :  { %869 = vmatprep.subr.bf16.mxu0 %v990_v0 }
 0x21d   :  { %871 = vmatpush3.bf16.msra.mxu0 %v870_v39 }
 0x21e   :  { %872 = vmatprep.subr.bf16.mxu0 %v990_v0 }
 0x221   :  { %874 = vmatpush3.bf16.msra.mxu0 %v873_v42 }
 0x222   :  { %875 = vmatprep.subr.bf16.mxu0 %v990_v0 }
 0x225   :  { %877 = vmatpush3.bf16.msra.mxu0 %v876_v50 }
 0x2dc   :  { %v352_v44 = vpop.f32.mrb[2].mxu1 }
 0x2dd   :  { %v353_v45 = vadd.f32 %v564_v43, %v352_v44  ;;  %v727_v46 = vpop.f32.mrb[3].mxu1 }
 0x2df   :  { %v356_v47 = vmax.f32 %v353_v45, 0.0 }
 0x2e1   :  { %745 = vmatmul.mubr.msk.f32.vlgmr.msra.gmra.mrb[4].mxu1 %vm282_vm1, %v356_v47 }
 0x3b4   :  { %v441_v52 = vpop.f32.mrb[4].mxu1 }
 0x3b5   :  { %v442_v0 = vadd.f32 %v566_v51, %v441_v52  ;;  %v746_v53 = vpop.f32.mrb[5].mxu1 }
 0x3b7   :  { %v445_v54 = vmax.f32 %v442_v0, 0.0 }
 0x3b9   :  { %780 = vmatmul.mubr.f32.vlgmr.msra.gmra.mrb[2].mxu0 %v445_v54 }
 0x48c   :  { %v535_v56 = vpop.f32.mrb[2].mxu0 }
 0x48d   :  { %v536_v57 = vadd.f32 %v568_v55, %v535_v56  ;;  %v781_v58 = vpop.f32.mrb[3].mxu0 }
 0x48f   :  { %v569_v59 = vmul.f32 -1.442695, %v536_v57 }
 0x491   :  { %887 = vpow2.f32 %v569_v59 }
 0x49b   :  { %v888_v60 = vpop.eup %887 }
 0x49c   :  { %v542_v61 = vadd.f32 1.0, %v888_v60 }
 0x49e   :  { %889 = vrcp.f32 %v542_v61 }
 0x4a8   :  { %v890_v62 = vpop.eup %889 }
 0x4a9   :  { %545 = vst [vmem:[#allocation8] sm:$0xff] %v890_v62 }
 0x4aa   :  { %968 = shalt.err (!%p965_p0)
}
 0x4ab   :  { %s969_s0 = scalar_lea.hbm %s1298_s11, 128 }
 0x4ac   :  { %p970_p1 = scmp.ne.s32.totalorder %s1298_s11, %s969_s0  ;;  %p973_p2 = scmp.lt.u32.totalorder %s969_s0, %s1298_s11 }
 0x4ae   :  { %p975_p3 = pnand %p973_p2, %p970_p1 }
 0x4b0   :  { %978 = shalt.err (!%p975_p3)
}
 0x4b1   :  { %555 = dma.vmem_to_hbm [thread:$0]  %s553_s16, 128, %s1298_s11, [#allocation4]  }
 0x4b2   :  { %983 = dma.done.wait [#allocation4], 128  }
 0x4b3   :  { %984 = vsyncadd [#allocation4], 4294967168 }
 0x4b4   :  { %559 = vsyncpa [#allocation3], 1 }
 0x4b5   :  { %560 = vsyncpa [#allocation6], 1 }
 0x4b6   :  { %561 = vsyncpa [#allocation4], 1 }

</bundles_post_ra>
